<compile_context>
chip_gen: v5e
topology: v5e:2x2
jax: 0.10.0
libtpu: 0.0.40
codegen_flags: <defaults>
</compile_context>

<pallas_src>
import functools

import jax
import jax.numpy as jnp
from jax import lax
from jax.experimental import pallas as pl
from jax.experimental.pallas import tpu as pltpu


COMPUTE_DTYPE = jnp.bfloat16          # MXU-native operand dtype on v5e/v6e/v7x


def _select_vmem_limit_bytes():
    """Per-generation scoped-VMEM budget: v5e/v6e have 128 MiB physical VMEM, v7x has 64 MiB."""
    try:
        kind = jax.devices()[0].device_kind.lower()
    except Exception:
        kind = ""
    if "v7" in kind:
        return 48 * 1024 * 1024
    if "v5" in kind or "v6" in kind:
        return 100 * 1024 * 1024
    return 64 * 1024 * 1024           # unknown generation: stay conservative


_VMEM_LIMIT_BYTES = _select_vmem_limit_bytes()
_BIG_VMEM = _VMEM_LIMIT_BYTES >= 96 * 1024 * 1024

# Tile targets (small dims fall back to the full extent).
_TM = 512                             # activation row tile
_TN = 768                             # lane tile: full hidden for BERT-base, multiple of 256
_TK = 1536 if _BIG_VMEM else 1024     # contraction tile: single pass whenever K <= _TK


def _pick_tile(dim, target, align):
    """Largest tile <= target that divides dim and is a multiple of align, else full dim."""
    if dim <= target or dim % align != 0:
        return dim
    t = (min(target, dim) // align) * align
    while t >= align:
        if dim % t == 0:
            return t
        t -= align
    return dim


def _gelu(y):
    # TODO(synk): HF BERT default is exact erf-GELU; tanh approximation kept here.
    return 0.5 * y * (1.0 + jnp.tanh(0.7978845608028654 * (y + 0.044715 * y * y * y)))


# ----------------------------- Tiled dense (matmul + bias + optional activation) -----------------------------

def _dense_onepass_kernel(x_ref, w_ref, b_ref, o_ref, *, act):
    y = jnp.dot(x_ref[...], w_ref[...], preferred_element_type=jnp.float32)
    y = y + b_ref[...].astype(jnp.float32)
    if act == "gelu":
        y = _gelu(y)
    o_ref[...] = y.astype(o_ref.dtype)


def _dense_acc_kernel(x_ref, w_ref, b_ref, o_ref, acc_ref, *, act):
    k = pl.program_id(2)

    @pl.when(k == 0)
    def _():
        acc_ref[...] = jnp.zeros_like(acc_ref)

    acc_ref[...] += jnp.dot(x_ref[...], w_ref[...], preferred_element_type=jnp.float32)

    @pl.when(k == pl.num_programs(2) - 1)
    def _():
        y = acc_ref[...] + b_ref[...].astype(jnp.float32)
        if act == "gelu":
            y = _gelu(y)
        o_ref[...] = y.astype(o_ref.dtype)


def dense(x, w, b, act=None, out_dtype=None):
    """Tiled x:[M,K] @ w:[K,N] + b:[N] with optional activation."""
    M, K = x.shape
    N = w.shape[1]
    out_dtype = out_dtype or x.dtype
    tm = _pick_tile(M, _TM, 8)
    tn = _pick_tile(N, _TN, 128)
    tk = _pick_tile(K, _TK, 128)
    b2 = b.reshape(1, N)

    if tk == K:
        # Single-pass contraction: no accumulator scratch, no pl.when init/finalize.
        return pl.pallas_call(
            functools.partial(_dense_onepass_kernel, act=act),
            out_shape=jax.ShapeDtypeStruct((M, N), out_dtype),
            grid=(M // tm, N // tn),
            in_specs=[
                pl.BlockSpec((tm, K), lambda i, j: (i, 0)),
                pl.BlockSpec((K, tn), lambda i, j: (0, j)),
                pl.BlockSpec((1, tn), lambda i, j: (0, j)),
            ],
            out_specs=pl.BlockSpec((tm, tn), lambda i, j: (i, j)),
            compiler_params=pltpu.CompilerParams(
                dimension_semantics=("parallel", "parallel"),
                vmem_limit_bytes=_VMEM_LIMIT_BYTES),
        )(x, w, b2)

    return pl.pallas_call(
        functools.partial(_dense_acc_kernel, act=act),
        out_shape=jax.ShapeDtypeStruct((M, N), out_dtype),
        grid=(M // tm, N // tn, K // tk),
        in_specs=[
            pl.BlockSpec((tm, tk), lambda i, j, k: (i, k)),
            pl.BlockSpec((tk, tn), lambda i, j, k: (k, j)),
            pl.BlockSpec((1, tn), lambda i, j, k: (0, j)),
        ],
        out_specs=pl.BlockSpec((tm, tn), lambda i, j, k: (i, j)),
        scratch_shapes=[pltpu.VMEM((tm, tn), jnp.float32)],
        compiler_params=pltpu.CompilerParams(
            dimension_semantics=("parallel", "parallel", "arbitrary"),
            vmem_limit_bytes=_VMEM_LIMIT_BYTES),
    )(x, w, b2)


# ----------------------------- Fused dense + residual-add + LayerNorm -----------------------------

def _dense_add_ln_onepass_kernel(x_ref, w_ref, b_ref, r_ref, g_ref, bt_ref, o_ref, *, eps):
    y = jnp.dot(x_ref[...], w_ref[...], preferred_element_type=jnp.float32)
    y = y + b_ref[...].astype(jnp.float32) + r_ref[...].astype(jnp.float32)
    mean = jnp.mean(y, axis=-1, keepdims=True)
    c = y - mean
    var = jnp.mean(c * c, axis=-1, keepdims=True)
    yn = c * lax.rsqrt(var + eps)
    o_ref[...] = (yn * g_ref[...].astype(jnp.float32)
                  + bt_ref[...].astype(jnp.float32)).astype(o_ref.dtype)


def _dense_add_ln_acc_kernel(x_ref, w_ref, b_ref, r_ref, g_ref, bt_ref, o_ref, acc_ref, *, eps):
    k = pl.program_id(1)

    @pl.when(k == 0)
    def _():
        acc_ref[...] = jnp.zeros_like(acc_ref)

    acc_ref[...] += jnp.dot(x_ref[...], w_ref[...], preferred_element_type=jnp.float32)

    @pl.when(k == pl.num_programs(1) - 1)
    def _():
        y = acc_ref[...] + b_ref[...].astype(jnp.float32) + r_ref[...].astype(jnp.float32)
        mean = jnp.mean(y, axis=-1, keepdims=True)
        c = y - mean
        var = jnp.mean(c * c, axis=-1, keepdims=True)
        yn = c * lax.rsqrt(var + eps)
        o_ref[...] = (yn * g_ref[...].astype(jnp.float32)
                      + bt_ref[...].astype(jnp.float32)).astype(o_ref.dtype)


def dense_add_layernorm(x, w, b, residual, gamma, beta, eps=1e-12, out_dtype=None):
    """LayerNorm(x @ w + b + residual) in one kernel; full-H lane-dense output block."""
    M, K = x.shape
    N = w.shape[1]
    out_dtype = out_dtype or residual.dtype
    tm = _pick_tile(M, _TM, 8)
    tk = _pick_tile(K, _TK, 128)
    args = (x, w, b.reshape(1, N), residual, gamma.reshape(1, N), beta.reshape(1, N))

    if tk == K:
        return pl.pallas_call(
            functools.partial(_dense_add_ln_onepass_kernel, eps=eps),
            out_shape=jax.ShapeDtypeStruct((M, N), out_dtype),
            grid=(M // tm,),
            in_specs=[
                pl.BlockSpec((tm, K), lambda i: (i, 0)),
                pl.BlockSpec((K, N), lambda i: (0, 0)),
                pl.BlockSpec((1, N), lambda i: (0, 0)),
                pl.BlockSpec((tm, N), lambda i: (i, 0)),
                pl.BlockSpec((1, N), lambda i: (0, 0)),
                pl.BlockSpec((1, N), lambda i: (0, 0)),
            ],
            out_specs=pl.BlockSpec((tm, N), lambda i: (i, 0)),
            compiler_params=pltpu.CompilerParams(
                dimension_semantics=("parallel",),
                vmem_limit_bytes=_VMEM_LIMIT_BYTES),
        )(*args)

    return pl.pallas_call(
        functools.partial(_dense_add_ln_acc_kernel, eps=eps),
        out_shape=jax.ShapeDtypeStruct((M, N), out_dtype),
        grid=(M // tm, K // tk),
        in_specs=[
            pl.BlockSpec((tm, tk), lambda i, k: (i, k)),
            pl.BlockSpec((tk, N), lambda i, k: (k, 0)),
            pl.BlockSpec((1, N), lambda i, k: (0, 0)),
            pl.BlockSpec((tm, N), lambda i, k: (i, 0)),
            pl.BlockSpec((1, N), lambda i, k: (0, 0)),
            pl.BlockSpec((1, N), lambda i, k: (0, 0)),
        ],
        out_specs=pl.BlockSpec((tm, N), lambda i, k: (i, 0)),
        scratch_shapes=[pltpu.VMEM((tm, N), jnp.float32)],
        compiler_params=pltpu.CompilerParams(
            dimension_semantics=("parallel", "arbitrary"),
            vmem_limit_bytes=_VMEM_LIMIT_BYTES),
    )(*args)


# ----------------------------- Fused embedding add + LayerNorm -----------------------------

def _emb_add_ln_kernel(w_ref, p_ref, t_ref, g_ref, b_ref, o_ref, *, eps):
    x = (w_ref[0].astype(jnp.float32) + p_ref[...].astype(jnp.float32)
         + t_ref[...].astype(jnp.float32))
    mean = jnp.mean(x, axis=-1, keepdims=True)
    c = x - mean
    var = jnp.mean(c * c, axis=-1, keepdims=True)
    y = c * lax.rsqrt(var + eps)
    o_ref[0] = (y * g_ref[...].astype(jnp.float32)
                + b_ref[...].astype(jnp.float32)).astype(o_ref.dtype)


def embedding_layernorm(word, pos, tok, gamma, beta, eps=1e-12, out_dtype=COMPUTE_DTYPE):
    """LayerNorm(word + pos + type) fused; word:[B,S,H], pos:[S,H], tok:[H]."""
    B, S, H = word.shape
    ts = _pick_tile(S, _TM, 8)
    return pl.pallas_call(
        functools.partial(_emb_add_ln_kernel, eps=eps),
        out_shape=jax.ShapeDtypeStruct((B, S, H), out_dtype),
        grid=(B, S // ts),
        in_specs=[
            pl.BlockSpec((1, ts, H), lambda b, s: (b, s, 0)),
            pl.BlockSpec((ts, H), lambda b, s: (s, 0)),
            pl.BlockSpec((1, H), lambda b, s: (0, 0)),
            pl.BlockSpec((1, H), lambda b, s: (0, 0)),
            pl.BlockSpec((1, H), lambda b, s: (0, 0)),
        ],
        out_specs=pl.BlockSpec((1, ts, H), lambda b, s: (b, s, 0)),
        compiler_params=pltpu.CompilerParams(
            dimension_semantics=("parallel", "parallel"),
            vmem_limit_bytes=_VMEM_LIMIT_BYTES),
    )(word, pos, tok.reshape(1, H), gamma.reshape(1, H), beta.reshape(1, H))


# ----------------------------- Multi-head attention (head-major, grid over (B, heads)) -----------------------------

def _attention_kernel(q_ref, k_ref, v_ref, m_ref, o_ref):
    q = q_ref[0, 0]                        # [S, dh]  (1/sqrt(dh) pre-folded into QKV weights)
    k = k_ref[0, 0]                        # [S, dh]
    v = v_ref[0, 0]                        # [S, dh]
    bias = m_ref[0].astype(jnp.float32)    # [1, S] additive mask
    s = lax.dot_general(q, k, (((1,), (1,)), ((), ())),
                        preferred_element_type=jnp.float32) + bias
    s = s - jnp.max(s, axis=-1, keepdims=True)
    p = jnp.exp(s)
    p = p * pl.reciprocal(jnp.sum(p, axis=-1, keepdims=True), approx=True)
    ctx = jnp.dot(p.astype(v.dtype), v, preferred_element_type=jnp.float32)
    o_ref[0, 0] = ctx.astype(o_ref.dtype)


def multi_head_attention(qkv, mask_bias, B, S, heads, dh):
    """qkv: [B*S, 3H]; mask_bias: [B, 1, S].  One-time XLA transpose to head-major
    [B, heads, S, dh] so head selection is a free leading-axis block index."""
    qkv5 = qkv.reshape(B, S, 3, heads, dh).transpose(2, 0, 3, 1, 4)  # [3, B, heads, S, dh]
    q, k, v = qkv5[0], qkv5[1], qkv5[2]
    ctx = pl.pallas_call(
        _attention_kernel,
        out_shape=jax.ShapeDtypeStruct((B, heads, S, dh), qkv.dtype),
        grid=(B, heads),
        in_specs=[
            pl.BlockSpec((1, 1, S, dh), lambda b, h: (b, h, 0, 0)),
            pl.BlockSpec((1, 1, S, dh), lambda b, h: (b, h, 0, 0)),
            pl.BlockSpec((1, 1, S, dh), lambda b, h: (b, h, 0, 0)),
            pl.BlockSpec((1, 1, S), lambda b, h: (b, 0, 0)),
        ],
        out_specs=pl.BlockSpec((1, 1, S, dh), lambda b, h: (b, h, 0, 0)),
        compiler_params=pltpu.CompilerParams(
            dimension_semantics=("parallel", "parallel"),
            vmem_limit_bytes=_VMEM_LIMIT_BYTES),
    )(q, k, v, mask_bias)
    return ctx.transpose(0, 2, 1, 3).reshape(B * S, heads * dh)


# ----------------------------- Fused pooler + dropout(identity) + classifier -----------------------------

def _head_kernel(x_ref, pw_ref, pb_ref, ow_ref, ob_ref, o_ref):
    pooled = jnp.tanh(jnp.dot(x_ref[...], pw_ref[...], preferred_element_type=jnp.float32)
                      + pb_ref[...].astype(jnp.float32))
    # TODO(synk): nn.Dropout(p=0.3) is the identity here (inference/eval semantics).
    logits = jnp.dot(pooled.astype(ow_ref.dtype), ow_ref[...],
                     preferred_element_type=jnp.float32) + ob_ref[...].astype(jnp.float32)
    o_ref[...] = logits.astype(o_ref.dtype)


def classifier_head(cls, pooler_w, pooler_b, out_w, out_b):
    B, H = cls.shape
    C = out_w.shape[1]
    return pl.pallas_call(
        _head_kernel,
        out_shape=jax.ShapeDtypeStruct((B, C), jnp.float32),
        grid=(1,),
        in_specs=[
            pl.BlockSpec((B, H), lambda i: (0, 0)),
            pl.BlockSpec((H, H), lambda i: (0, 0)),
            pl.BlockSpec((1, H), lambda i: (0, 0)),
            pl.BlockSpec((H, C), lambda i: (0, 0)),
            pl.BlockSpec((1, C), lambda i: (0, 0)),
        ],
        out_specs=pl.BlockSpec((B, C), lambda i: (0, 0)),
    )(cls, pooler_w, pooler_b.reshape(1, H), out_w, out_b.reshape(1, C))


# ----------------------------- Parameters -----------------------------

def init_params(key, *, vocab, max_pos, hidden, heads, inter, n_layers, n_classes):
    keys = jax.random.split(key, 8 + n_layers)
    dh = hidden // heads
    scale = 1.0 / (dh ** 0.5)

    def w(k, shape):
        return jax.random.normal(k, shape, jnp.float32) * 0.02

    params = {
        "hidden": hidden,
        "heads": heads,
        "word_emb": jax.random.normal(keys[0], (vocab, hidden), jnp.float32) * 0.02,
        "pos_emb": jax.random.normal(keys[1], (max_pos, hidden), jnp.float32) * 0.02,
        "type_emb": jax.random.normal(keys[2], (2, hidden), jnp.float32) * 0.02,
        "emb_ln_g": jnp.ones((hidden,), jnp.float32),
        "emb_ln_b": jnp.zeros((hidden,), jnp.float32),
        "pooler_w": w(keys[3], (hidden, hidden)).astype(COMPUTE_DTYPE),
        "pooler_b": jnp.zeros((hidden,), jnp.float32),
        "out_w": w(keys[4], (hidden, n_classes)).astype(COMPUTE_DTYPE),
        "out_b": jnp.zeros((n_classes,), jnp.float32),
        "layers": [],
    }
    for li in range(n_layers):
        lk = jax.random.split(keys[8 + li], 4)
        # Q/K/V fused into one [H, 3H] matmul; fold 1/sqrt(dh) attention scale into the Q
        # columns (weights + bias) at parameter-prep time (pre-trained weights would be
        # pre-scaled the same way at load time).
        qkv_w = w(lk[0], (hidden, 3 * hidden))
        qkv_b = jnp.zeros((3 * hidden,), jnp.float32)
        qkv_w = qkv_w.at[:, :hidden].multiply(scale)
        qkv_b = qkv_b.at[:hidden].multiply(scale)
        params["layers"].append({
            "qkv_w": qkv_w.astype(COMPUTE_DTYPE), "qkv_b": qkv_b,
            "ao_w": w(lk[1], (hidden, hidden)).astype(COMPUTE_DTYPE),
            "ao_b": jnp.zeros((hidden,), jnp.float32),
            "attn_ln_g": jnp.ones((hidden,), jnp.float32),
            "attn_ln_b": jnp.zeros((hidden,), jnp.float32),
            "i_w": w(lk[2], (hidden, inter)).astype(COMPUTE_DTYPE),
            "i_b": jnp.zeros((inter,), jnp.float32),
            "o_w": w(lk[3], (inter, hidden)).astype(COMPUTE_DTYPE),
            "o_b": jnp.zeros((hidden,), jnp.float32),
            "ffn_ln_g": jnp.ones((hidden,), jnp.float32),
            "ffn_ln_b": jnp.zeros((hidden,), jnp.float32),
        })
    return params


# ----------------------------- Forward pass -----------------------------

def encoder_layer(h, lyr, mask_bias, B, S, heads):
    M, H = h.shape
    dh = H // heads

    # Fused QKV projection -> one [M, 3H] matmul (attention scale already folded in).
    qkv = dense(h, lyr["qkv_w"], lyr["qkv_b"])
    ctx = multi_head_attention(qkv, mask_bias, B, S, heads, dh)

    # Attention-output projection + residual + LayerNorm fused.
    h = dense_add_layernorm(ctx, lyr["ao_w"], lyr["ao_b"], h,
                            lyr["attn_ln_g"], lyr["attn_ln_b"])
    # FFN: intermediate GELU dense, then output projection + residual + LayerNorm fused.
    ffn = dense(h, lyr["i_w"], lyr["i_b"], act="gelu")
    h = dense_add_layernorm(ffn, lyr["o_w"], lyr["o_b"], h,
                            lyr["ffn_ln_g"], lyr["ffn_ln_b"])
    return h


def toxic_comment_classifier_forward(params, input_ids, attention_mask):
    B, S = input_ids.shape
    H = params["hidden"]
    heads = params["heads"]

    # Embedding gathers are plain-JAX glue; the add + LayerNorm is one fused kernel
    # (no [M, H] f32 round-trip through HBM).
    word = params["word_emb"][input_ids]               # [B, S, H]
    pos = params["pos_emb"][:S]                        # [S, H]
    tok = params["type_emb"][0]                        # token_type_ids = 0
    h = embedding_layernorm(word, pos, tok, params["emb_ln_g"], params["emb_ln_b"],
                            out_dtype=COMPUTE_DTYPE).reshape(B * S, H)

    # Additive attention mask kept as [B, 1, S] (no heads broadcast in HBM).
    mask_bias = ((1.0 - attention_mask.astype(jnp.float32)) * -1e9).reshape(B, 1, S)

    for lyr in params["layers"]:
        h = encoder_layer(h, lyr, mask_bias, B, S, heads)

    cls = h.reshape(B, S, H)[:, 0, :]                  # [B, H] CLS token
    # Pooler (tanh dense) + dropout(identity) + classifier, one tiny fused kernel.
    logits = classifier_head(cls, params["pooler_w"], params["pooler_b"],
                             params["out_w"], params["out_b"])
    return logits


# ----------------------------- Demo -----------------------------

if __name__ == "__main__":
    VOCAB, MAX_POS = 100, 16
    HIDDEN, HEADS, INTER, LAYERS = 32, 4, 64, 2
    N_CLASSES = 6
    B, S = 2, 8

    root = jax.random.PRNGKey(0)
    k_param, k_ids = jax.random.split(root)

    params = init_params(k_param, vocab=VOCAB, max_pos=MAX_POS, hidden=HIDDEN,
                         heads=HEADS, inter=INTER, n_layers=LAYERS, n_classes=N_CLASSES)

    input_ids = jax.random.randint(k_ids, (B, S), 0, VOCAB, dtype=jnp.int32)
    attention_mask = jnp.array([[1, 1, 1, 1, 1, 1, 1, 1],
                                [1, 1, 1, 1, 1, 1, 0, 0]], dtype=jnp.int32)

    logits = toxic_comment_classifier_forward(params, input_ids, attention_mask)
    jax.block_until_ready(logits)
    assert logits.shape == (B, N_CLASSES)
    assert bool(jnp.all(jnp.isfinite(logits)))
    print("KERNEL_OK")
</pallas_src>

<mosaic_0001>
module attributes {stable_mosaic.version = 11 : i64} {
  func.func @_emb_add_ln_kernel(%arg0: i32, %arg1: i32, %arg2: memref<1x8x32xf32, #tpu.memory_space<vmem>>, %arg3: memref<8x32xf32, #tpu.memory_space<vmem>>, %arg4: memref<1x32xf32, #tpu.memory_space<vmem>>, %arg5: memref<1x32xf32, #tpu.memory_space<vmem>>, %arg6: memref<1x32xf32, #tpu.memory_space<vmem>>, %arg7: memref<1x8x32xbf16, #tpu.memory_space<vmem>>) attributes {dimension_semantics = [#tpu.dimension_semantics<parallel>, #tpu.dimension_semantics<parallel>], iteration_bounds = array<i64: 2, 1>, scalar_prefetch = 0 : i64, scratch_operands = 0 : i64, tpu.core_type = #tpu.core_type<tc>, window_params = [{transform_indices = @transform_0, window_bounds = array<i64: 1, 8, 32>}, {transform_indices = @transform_1, window_bounds = array<i64: 8, 32>}, {pipeline_mode = #tpu.pipeline_mode<synchronous>, transform_indices = @transform_2, window_bounds = array<i64: 1, 32>}, {pipeline_mode = #tpu.pipeline_mode<synchronous>, transform_indices = @transform_3, window_bounds = array<i64: 1, 32>}, {pipeline_mode = #tpu.pipeline_mode<synchronous>, transform_indices = @transform_4, window_bounds = array<i64: 1, 32>}, {transform_indices = @transform_5, window_bounds = array<i64: 1, 8, 32>}]} {
    %c0 = arith.constant 0 : index
    %c0_0 = arith.constant 0 : index
    %c0_1 = arith.constant 0 : index
    %0 = vector.load %arg2[%c0, %c0_0, %c0_1] : memref<1x8x32xf32, #tpu.memory_space<vmem>>, vector<1x8x32xf32>
    %1 = vector.shape_cast %0 : vector<1x8x32xf32> to vector<8x32xf32>
    %c0_2 = arith.constant 0 : index
    %c0_3 = arith.constant 0 : index
    %2 = vector.load %arg3[%c0_2, %c0_3] : memref<8x32xf32, #tpu.memory_space<vmem>>, vector<8x32xf32>
    %3 = arith.addf %1, %2 : vector<8x32xf32>
    %c0_4 = arith.constant 0 : index
    %c0_5 = arith.constant 0 : index
    %4 = vector.load %arg4[%c0_4, %c0_5] : memref<1x32xf32, #tpu.memory_space<vmem>>, vector<1x32xf32>
    %5 = vector.broadcast %4 : vector<1x32xf32> to vector<8x32xf32>
    %6 = arith.addf %3, %5 : vector<8x32xf32>
    %cst = arith.constant dense<0.000000e+00> : vector<8xf32>
    %7 = vector.multi_reduction <add>, %6, %cst [1] : vector<8x32xf32> to vector<8xf32>
    %8 = vector.shape_cast %7 : vector<8xf32> to vector<8x1xf32>
    %cst_6 = arith.constant 3.200000e+01 : f32
    %9 = vector.broadcast %cst_6 : f32 to vector<8x1xf32>
    %10 = arith.divf %8, %9 : vector<8x1xf32>
    %11 = vector.broadcast %10 : vector<8x1xf32> to vector<8x32xf32>
    %12 = arith.subf %6, %11 : vector<8x32xf32>
    %13 = arith.mulf %12, %12 : vector<8x32xf32>
    %cst_7 = arith.constant dense<0.000000e+00> : vector<8xf32>
    %14 = vector.multi_reduction <add>, %13, %cst_7 [1] : vector<8x32xf32> to vector<8xf32>
    %15 = vector.shape_cast %14 : vector<8xf32> to vector<8x1xf32>
    %cst_8 = arith.constant 3.200000e+01 : f32
    %16 = vector.broadcast %cst_8 : f32 to vector<8x1xf32>
    %17 = arith.divf %15, %16 : vector<8x1xf32>
    %cst_9 = arith.constant 9.99999996E-13 : f32
    %18 = vector.broadcast %cst_9 : f32 to vector<8x1xf32>
    %19 = arith.addf %17, %18 : vector<8x1xf32>
    %20 = math.rsqrt %19 : vector<8x1xf32>
    %21 = vector.broadcast %20 : vector<8x1xf32> to vector<8x32xf32>
    %22 = arith.mulf %12, %21 : vector<8x32xf32>
    %c0_10 = arith.constant 0 : index
    %c0_11 = arith.constant 0 : index
    %23 = vector.load %arg5[%c0_10, %c0_11] : memref<1x32xf32, #tpu.memory_space<vmem>>, vector<1x32xf32>
    %24 = vector.broadcast %23 : vector<1x32xf32> to vector<8x32xf32>
    %25 = arith.mulf %22, %24 : vector<8x32xf32>
    %c0_12 = arith.constant 0 : index
    %c0_13 = arith.constant 0 : index
    %26 = vector.load %arg6[%c0_12, %c0_13] : memref<1x32xf32, #tpu.memory_space<vmem>>, vector<1x32xf32>
    %27 = vector.broadcast %26 : vector<1x32xf32> to vector<8x32xf32>
    %28 = arith.addf %25, %27 : vector<8x32xf32>
    %29 = arith.truncf %28 : vector<8x32xf32> to vector<8x32xbf16>
    %c0_14 = arith.constant 0 : index
    %c0_15 = arith.constant 0 : index
    %c0_16 = arith.constant 0 : index
    %30 = vector.load %arg7[%c0_14, %c0_15, %c0_16] : memref<1x8x32xbf16, #tpu.memory_space<vmem>>, vector<1x8x32xbf16>
    %31 = vector.shape_cast %30 : vector<1x8x32xbf16> to vector<8x32xbf16>
    %32 = vector.shape_cast %29 : vector<8x32xbf16> to vector<1x8x32xbf16>
    tpu.vector_store %arg7[%c0_14, %c0_15, %c0_16], %32 {strides = array<i32>} : memref<1x8x32xbf16, #tpu.memory_space<vmem>>, vector<1x8x32xbf16>,
    return
  }
  func.func @transform_0(%arg0: i32, %arg1: i32) -> (i32, i32, i32) {
    %c0_i32 = arith.constant 0 : i32
    %c0_i32_0 = arith.constant 0 : i32
    return %arg0, %arg1, %c0_i32 : i32, i32, i32
  }
  func.func @transform_1(%arg0: i32, %arg1: i32) -> (i32, i32) {
    %c0_i32 = arith.constant 0 : i32
    %c0_i32_0 = arith.constant 0 : i32
    return %arg1, %c0_i32 : i32, i32
  }
  func.func @transform_2(%arg0: i32, %arg1: i32) -> (i32, i32) {
    %c0_i32 = arith.constant 0 : i32
    %c0_i32_0 = arith.constant 0 : i32
    %c0_i32_1 = arith.constant 0 : i32
    return %c0_i32, %c0_i32_0 : i32, i32
  }
  func.func @transform_3(%arg0: i32, %arg1: i32) -> (i32, i32) {
    %c0_i32 = arith.constant 0 : i32
    %c0_i32_0 = arith.constant 0 : i32
    %c0_i32_1 = arith.constant 0 : i32
    return %c0_i32, %c0_i32_0 : i32, i32
  }
  func.func @transform_4(%arg0: i32, %arg1: i32) -> (i32, i32) {
    %c0_i32 = arith.constant 0 : i32
    %c0_i32_0 = arith.constant 0 : i32
    %c0_i32_1 = arith.constant 0 : i32
    return %c0_i32, %c0_i32_0 : i32, i32
  }
  func.func @transform_5(%arg0: i32, %arg1: i32) -> (i32, i32, i32) {
    %c0_i32 = arith.constant 0 : i32
    %c0_i32_0 = arith.constant 0 : i32
    return %arg0, %arg1, %c0_i32 : i32, i32, i32
  }
}

</mosaic_0001>

<bundles_post_ra>
// kernel: tpu_custom_call.1
= control target key start
LH: loop header
LB: loop body
LE: loop exit
PB: predicated region body
PF: predicated region fallthrough
CT: control target
= control target key end

     0   :  { %s878_s0 = inlined_call_operand.hbm [shape: f32[2,8,32], index: 0, kind: input, shape index: {}]   ;;  %s879_s1 = inlined_call_operand.hbm [shape: f32[8,32], index: 1, kind: input, shape index: {}]   ;;  %s880_s2 = inlined_call_operand.vmem [shape: f32[1,32], index: 2, kind: input, shape index: {}]   ;;  %s881_s3 = inlined_call_operand.vmem [shape: f32[1,32], index: 3, kind: input, shape index: {}]   ;;  %s882_s4 = inlined_call_operand.vmem [shape: f32[1,32], index: 4, kind: input, shape index: {}]   ;;  %s883_s5 = inlined_call_operand.hbm [shape: bf16[2,8,32], index: 5, kind: output, shape index: {}]  }
   0x1   :  { %884 = sst [smem:[#allocation11_spill]] %s879_s1 }
   0x2   :  { %10 = vsyncpa [#allocation3], 0 }
   0x3   :  { %12 = vsyncpa [#allocation3 + $0x1], 0 }
   0x4   :  { %13 = vsyncpa [#allocation6], 0 }
   0x5   :  { %14 = vsyncpa [#allocation4], 0 }
   0x6   :  { %16 = vsyncpa [#allocation4 + $0x1], 0  ;;  %s717_s18 = smov 0   ;;  %s719_s19 = smov 0  }
   0x7   :  { %s721_s20 = smov 0   ;;  %s723_s21 = smov 0  }
   0x8   :  { %s725_s22 = smov 0   ;;  %s727_s23 = smov 0  }
   0x9 LB: > { %s441_s24 = sadd.s32 4294967295, %s683_s23   ;;  %s442_s25 = sadd.s32 4294967294, %s683_s23   ;;  %s683_s23 = sphi %s727_s23, %s22_s23   ;;  %s679_s22 = sphi %s725_s22, %s897_s22   ;;  %s675_s21 = sphi %s723_s21, %s896_s21   ;;  %s671_s20 = sphi %s721_s20, %s895_s20   ;;  %s667_s19 = sphi %s719_s19, %s894_s19   ;;  %s663_s18 = sphi %s717_s18, %s893_s18  }
   0xa   : > { %p56_p0 = scmp.ne.s32.totalorder %s667_s19, %s663_s18  ;;  %p751_p1 = scmp.eq.s32.totalorder %s441_s24, 0 }
   0xb   : > { %p755_p2 = scmp.eq.s32.totalorder %s441_s24, 1  ;;  %p177_p3 = scmp.eq.s32.totalorder %s442_s25, 1 }
   0xc   : > { %p761_p4 = por %p751_p1, %p56_p0  ;;  %p443_p5 = scmp.ge.s32.totalorder %s683_s23, 1 }
   0xd   : > { %p766_p6 = por %p177_p3, %p56_p0  ;;  %p184_p7 = scmp.lt.s32.totalorder %s683_s23, 3 }
   0xe   : > { %s889_s1 = sld [smem:[#allocation11_spill]]  ;;  %p445_p9 = scmp.ge.s32.totalorder %s683_s23, 2 }
   0xf   : > { %p774_p8 = pnand %p443_p5, %p184_p7  ;;  %s685_s9 = smov [#allocation5]  }
  0x10   : > { %s200_s10 = sshll.u32 %s685_s9, 4  ;;  %s34_s11 = sadd.s32 1, %s679_s22  ;;  %s201_s10 = int_to_ptr.vmem [resolvable:$true] %s200_s10 }
  0x11   : > { %p464_p10 = pneg %p774_p8  ;;  %p36_p12 = scmp.ge.s32.totalorder %s34_s11, 2 }
  0x12   : > { %s43_s12 = sadd.s32 1, %s671_s20  ;;  %p50_p13 = scmp.ne.s32.totalorder %s671_s20, %s667_s19 }
  0x13   : > { %p465_p11 = pnand %p464_p10, %p751_p1  ;;  %p51_p0 = scmp.eq.s32.totalorder %s683_s23, 0 }
  0x14   : > { %s198_s7 = sshll.u32 %s889_s1, 4  ;;  %s899_s11 = smov (%p36_p12, %s34_s11), 0  ;;  %s199_s7 = int_to_ptr.hbm [resolvable:$true] %s198_s7 }
  0x15   : > { %467 = dma.hbm_to_vmem [thread:$0]  (!%p465_p11), %s199_s7, 128, %s201_s10, [#allocation6]  }
  0x16   : > { %p790_p3 = por %p51_p0, %p50_p13  ;;  %p796_p5 = por %p755_p2, %p50_p13 }
  0x17   : > { %s38_s15 = ssub.s32 %s679_s22, %s899_s11  ;;  %p477_p7 = scmp.lt.s32.totalorder %s683_s23, 2 }
  0x18   : > { %p41_p10 = scmp.eq.s32.totalorder %s38_s15, 0  ;;  %s220_s16 = sand.u32 1, %s671_s20  }
  0x19   : > { %s446_s17 = sshll.u32 %s220_s16, 3  ;;  %s447_s25 = sshll.u32 %s679_s22, 3 }
  0x1a   : > { %s805_s24 = scalar_select %p41_p10, %s671_s20, %s43_s12  }
  0x1b   : > { %s229_s7 = scalar_lea.hbm %s878_s0, %s447_s25  ;;  %s224_s9 = scalar_lea.vmem [#allocation2], %s446_s17 }
  0x1c   : > { %s233_s10 = sshll.u32 %s224_s9, 4  ;;  %s231_s27 = sshll.u32 %s229_s7, 4  ;;  %s234_s10 = int_to_ptr.vmem [resolvable:$true] %s233_s10  ;;  %s232_s27 = int_to_ptr.hbm [resolvable:$true] %s231_s27 }
  0x1d   : > { %p469_p2 = pnand %p477_p7, %p790_p3  ;;  %s221_s1 = scalar_lea.sflag [#allocation3], %s220_s16 }
  0x1e   : > { %242 = sbr.rel (%p774_p8) target bundleno = 316 (0x13c), region = 40  ;;  %s816_s12 = sand.u32 (!%p774_p8), 1, %s667_s19  }
  0x1f   : > { %471 = dma.hbm_to_vmem [thread:$0]  (!%p469_p2), %s232_s27, 128, %s234_s10, %s221_s1  }
  0x20   : > { %s449_s15 = sshll.u32 (!%p774_p8), %s816_s12, 3  ;;  %s245_s25 = scalar_lea.sflag (!%p774_p8), [#allocation3], %s816_s12 }
  0x21   : > { %s248_s17 = scalar_lea.vmem (!%p774_p8), [#allocation2], %s449_s15 }
  0x23   : > { %650 = dma.done.wait (%p761_p4), %s245_s25, 128  }
  0x24   : > { %652 = vsyncadd (%p761_p4), %s245_s25, 4294967168 }
  0x25   : > { %654 = dma.done.wait (%p751_p1), [#allocation6], 128  }
  0x26   : > { %656 = vsyncadd (%p751_p1), [#allocation6], 4294967168  ;;  %v281_v0 = vld [vmem:[%s248_s17] sm:$0xff]  ;;  %v282_v1 = vld [vmem:[#allocation5] sm:$0xff]  ;;  %vm289_vm0 = vcmask 261120   ;;  %v686_v6 = vmov 32.0  }
  0x27   : > { %v283_v2 = vadd.f32 %v282_v1, %v281_v0  ;;  %v530_v3 = vld [vmem:[%s880_s2] ss:$0 sm:$0xff]  ;;  %533 = vrcp.f32 %v686_v6  ;;  %s451_s26 = sshll.u32 %s816_s12, 2  ;;  %s453_s28 = sshll.u32 %s675_s21, 2  ;;  %vm330_vm5 = vcmask 257024  }
  0x28   : > { %v531_v27 = vld [vmem:[%s881_s3] ss:$0 sm:$0xff]  ;;  %s344_s10 = scalar_lea.hbm %s883_s5, %s453_s28  ;;  %s280_s27 = scalar_lea.vmem [#allocation7], %s451_s26 }
  0x29   : > { %v288_v4 = vadd.f32 %v530_v3, %v283_v2  ;;  %v532_v29 = vld [vmem:[%s882_s4] ss:$0 sm:$0xff]  ;;  %s346_s21 = sshll.u32 %s280_s27, 4  ;;  %s348_s15 = sshll.u32 %s344_s10, 4  ;;  %s347_s21 = int_to_ptr.vmem [resolvable:$true] %s346_s21  ;;  %s349_s15 = int_to_ptr.hbm [resolvable:$true] %s348_s15 }
  0x2a   : > { %s333_s25 = scalar_lea.sflag [#allocation4], %s816_s12  ;;  %s611_s17 = sshra.s32 %s349_s15, 4  ;;  %s612_s17 = int_to_ptr.hbm [resolvable:$true] %s611_s17 }
  0x2b   : > { %v290_v5 = vsel %vm289_vm0, %v288_v4, 0.0  ;;  %s613_s1 = scalar_lea.hbm %s612_s17, 4  ;;  %s617_s26 = scalar_lea.hbm %s883_s5, 8 }
  0x2c   : > { %291 = vadd.xlane.f32.xlu0 %v290_v5  ;;  %p614_p1 = scmp.ne.s32.totalorder %s612_s17, %s613_s1  ;;  %p618_p11 = scmp.lt.s32.totalorder %s612_s17, %s883_s5 }
  0x2d   : > { %v534_v7 = vpop.eup %533  ;;  %p619_p12 = scmp.lt.s32.totalorder %s617_s26, %s613_s1 }
  0x2e   : > { %v294_v8 = vmul.f32 32.0, %v534_v7  ;;  %vm298_vm1 = vweird.f32 %v534_v7  ;;  %p615_p4 = pnand %p614_p1, %p796_p5 }
  0x2f   : > { %p620_p13 = por %p619_p12, %p618_p11 }
  0x30   : > { %v295_v9 = vsub.f32 1.0, %v294_v8  ;;  %p616_p8 = pneg %p615_p4 }
  0x32   : > { %v296_v10 = vmul.f32 %v534_v7, %v295_v9  ;;  %p621_p0 = pnand %p620_p13, %p616_p8 }
  0x34   : > { %v297_v11 = vadd.f32 %v534_v7, %v296_v10 }
  0x36   : > { %v299_v12 = vsel %vm298_vm1, %v534_v7, %v297_v11 }
  0x9f   : > { %v292_v13 = vpop.xlane.xlu0 %291 }
  0xa0   : > { %v300_v14 = vmul.f32 %v299_v12, %v292_v13 }
  0xa2   : > { %v301_v15 = vsub.f32 %v288_v4, %v300_v14 }
  0xa4   : > { %v302_v16 = vmul.f32 %v301_v15, %v301_v15 }
  0xa6   : > { %v303_v17 = vsel %vm289_vm0, %v302_v16, 0.0 }
  0xa7   : > { %304 = vadd.xlane.f32.xlu0 %v303_v17 }
 0x11a   : > { %v305_v18 = vpop.xlane.xlu0 %304 }
 0x11b   : > { %v306_v19 = vmul.f32 %v305_v18, %v299_v12 }
 0x11d   : > { %v307_v20 = vadd.f32 1e-12, %v306_v19 }
 0x11f   : > { %535 = vrsqrt.f32 %v307_v20  ;;  %vm314_vm3 = vweird.f32 %v307_v20 }
 0x125   : > { %v536_v21 = vpop.eup %535 }
 0x126   : > { %v309_v22 = vmul.f32 %v536_v21, %v307_v20  ;;  %vm315_vm2 = vweird.f32 %v536_v21 }
 0x127   : > { %vm316_vm4 = vmor %vm314_vm3, %vm315_vm2 }
 0x128   : > { %v310_v23 = vmul.f32 %v536_v21, %v309_v22 }
 0x12a   : > { %v311_v24 = vmul.f32 0.5, %v310_v23 }
 0x12c   : > { %v312_v25 = vsub.f32 1.5, %v311_v24 }
 0x12e   : > { %v313_v26 = vmul.f32 %v536_v21, %v312_v25 }
 0x130   : > { %v317_v28 = vsel %vm316_vm4, %v536_v21, %v313_v26 }
 0x131   : > { %v318_v30 = vmul.f32 %v317_v28, %v301_v15 }
 0x133   : > { %v323_v31 = vmul.f32 %v531_v27, %v318_v30 }
 0x135   : > { %v328_v32 = vadd.f32 %v532_v29, %v323_v31 }
 0x137   : > { %v329_v33 = vpack.c.bf16 %v328_v32, %v328_v32 }
 0x139   : > { %331 = vst.msk [vmem:[%s280_s27] sm:$0xf] %vm330_vm5, %v329_v33 }
 0x13a   : > { %624 = shalt.err (!%p621_p0)
}
 0x13b   : > { %462 = dma.vmem_to_hbm [thread:$0]  (%p796_p5), %s347_s21, 64, %s349_s15, %s333_s25  }
 0x13c PF: > { %s360_s12 = sand.u32 1, %s663_s18   ;;  %p473_p3 = pnand %p445_p9, %p766_p6 }
 0x13d   : > { %s361_s30 = scalar_lea.sflag [#allocation4], %s360_s12 }
 0x13e   : > { %p474_p7 = pneg %p473_p3 }
 0x140   : > { %658 = dma.done.wait (%p474_p7), %s361_s30, 64  }
 0x141   : > { %660 = vsyncadd (%p474_p7), %s361_s30, 4294967232  ;;  %s22_s23 = sadd.s32 1, %s683_s23   ;;  %s893_s18 = smov %s667_s19 }
 0x142   : > { %p19_p10 = scmp.ge.s32.totalorder %s22_s23, 4   ;;  %s894_s19 = smov %s671_s20 }
 0x143   : > { %s895_s20 = smov %s805_s24  ;;  %s896_s21 = smov %s679_s22 }
 0x144   : > { %s897_s22 = smov %s899_s11  ;;  %21 = sbr.rel (!%p19_p10) target bundleno = 9 (0x9), region = 90 }
 0x149   :  { %367 = vsyncpa [#allocation3], 1 }
 0x14a   :  { %369 = vsyncpa [#allocation3 + $0x1], 1 }
 0x14b   :  { %370 = vsyncpa [#allocation6], 1 }
 0x14c   :  { %371 = vsyncpa [#allocation4], 1 }
 0x14d   :  { %373 = vsyncpa [#allocation4 + $0x1], 1 }

</bundles_post_ra>
